<compile_context>
chip_gen: v7x
topology: tpu7x:2x2x1
jax: 0.10.0
libtpu: 0.0.40
codegen_flags: <defaults>
</compile_context>

<pallas_src>
import functools

import jax
import jax.numpy as jnp
from jax import lax
from jax.experimental import pallas as pl
from jax.experimental.pallas import tpu as pltpu

EPS = 1e-5
_MAX_CHUNK = 32 * 1024          # lane chunk for the two-pass (large-S) fallback


def _round_up(a, b):
    return ((a + b - 1) // b) * b


def _sublane(dtype):
    # sublane-dense row multiple: 8 for f32, 16 for bf16, 32 for 8-bit types.
    return max(8, 32 // jnp.dtype(dtype).itemsize)


def _vmem_params():
    """(tile-budget bytes, vmem_limit_bytes) derived from this chip's VMEM."""
    cap = 64 * 1024 * 1024                       # conservative fallback (v7x-sized)
    try:
        info = pltpu.get_tpu_info()
        cap = int(getattr(info, "vmem_capacity_bytes", cap))
    except Exception:
        pass
    budget = (3 * cap) // 8                       # ~48 MiB on v5e/v6e, ~24 MiB on v7x
    limit = int(min(cap, 2 * budget))             # explicit scoped-VMEM limit for Mosaic
    return int(budget), limit


# --------------------- single-pass kernel: one (TM, S) row tile per grid step
def _in_norm_rows_kernel(x_ref, o_ref, *, s_true):
    # One fused pass: accumulate sum / sum-of-squares on the lane axis, then a
    # single (x - mean) * rsqrt(var + eps) elementwise pass.
    xf = x_ref[...].astype(jnp.float32)
    inv_s = 1.0 / s_true
    s = jnp.sum(xf, axis=-1, keepdims=True)
    sq = jnp.sum(xf * xf, axis=-1, keepdims=True)
    mean = s * inv_s
    var = jnp.maximum(sq * inv_s - mean * mean, 0.0)
    inv = lax.rsqrt(var + EPS)
    o_ref[...] = ((xf - mean) * inv).astype(o_ref.dtype)


# --------------------- two-pass fallback for very large spatial extents -----
def _stats_kernel(x_ref, stats_ref, sum_sc, sq_sc, *, chunk, s_true):
    j = pl.program_id(1)

    @pl.when(j == 0)
    def _():
        sum_sc[...] = jnp.zeros_like(sum_sc)
        sq_sc[...] = jnp.zeros_like(sq_sc)

    xf = x_ref[...].astype(jnp.float32)
    # No host-side padding: lanes past the true spatial extent in the last chunk
    # contain garbage, so mask them before accumulating.
    lane = j * chunk + lax.broadcasted_iota(jnp.int32, xf.shape, 1)
    xf = jnp.where(lane < s_true, xf, 0.0)
    sum_sc[...] += jnp.sum(xf, axis=-1, keepdims=True)
    sq_sc[...] += jnp.sum(xf * xf, axis=-1, keepdims=True)

    @pl.when(j == pl.num_programs(1) - 1)
    def _():
        inv_s = 1.0 / s_true
        mean = sum_sc[...] * inv_s
        var = jnp.maximum(sq_sc[...] * inv_s - mean * mean, 0.0)
        inv = lax.rsqrt(var + EPS)
        # Combined stats tile: mean in lanes 0-63, rsqrt(var+eps) in lanes 64-127.
        sel = lax.broadcasted_iota(jnp.int32, stats_ref.shape, 1) < 64
        stats_ref[...] = jnp.where(sel,
                                   jnp.broadcast_to(mean, stats_ref.shape),
                                   jnp.broadcast_to(inv, stats_ref.shape))


def _normalize_kernel(x_ref, stats_ref, o_ref):
    xf = x_ref[...].astype(jnp.float32)
    mean = stats_ref[:, 0:1]
    inv = stats_ref[:, 64:65]
    o_ref[...] = ((xf - mean) * inv).astype(o_ref.dtype)


# --------------------- drivers ----------------------------------------------
def _instance_norm_single_pass(x2, R, S, tm, dtype, vmem_limit):
    return pl.pallas_call(
        functools.partial(_in_norm_rows_kernel, s_true=float(S)),
        out_shape=jax.ShapeDtypeStruct((R, S), dtype),
        grid_spec=pltpu.PrefetchScalarGridSpec(
            num_scalar_prefetch=0,
            grid=(pl.cdiv(R, tm),),
            in_specs=[pl.BlockSpec((tm, S), lambda i: (i, 0))],
            out_specs=pl.BlockSpec((tm, S), lambda i: (i, 0)),
        ),
        compiler_params=pltpu.CompilerParams(
            dimension_semantics=("parallel",),
            vmem_limit_bytes=vmem_limit,
        ),
    )(x2)


def _instance_norm_two_pass(x2, R, S, dtype, budget, vmem_limit):
    itemsize = jnp.dtype(dtype).itemsize
    sub = _sublane(dtype)
    chunk = min(_round_up(S, 128), _MAX_CHUNK)

    # in/out double-buffered in x.dtype (+ f32 upcast temporaries in the kernel).
    row_bytes = chunk * (4 * itemsize + 8)
    tm = max(sub, (budget // row_bytes) // sub * sub)
    if R >= 4 * sub:
        tm = min(tm, _round_up(pl.cdiv(R, 4), sub))   # >=4 row blocks (megacore/pipeline)
    if tm >= R:
        tm = R                                        # single full-extent row block
    n_r = pl.cdiv(R, tm)
    n_s = pl.cdiv(S, chunk)

    # Pass 1: per-row sum / sum-of-squares -> combined (mean | rsqrt(var+eps)) tile.
    stats = pl.pallas_call(
        functools.partial(_stats_kernel, chunk=chunk, s_true=S),
        out_shape=jax.ShapeDtypeStruct((R, 128), jnp.float32),
        grid_spec=pltpu.PrefetchScalarGridSpec(
            num_scalar_prefetch=0,
            grid=(n_r, n_s),
            in_specs=[pl.BlockSpec((tm, chunk), lambda i, j: (i, j))],
            out_specs=pl.BlockSpec((tm, 128), lambda i, j: (i, 0)),
            scratch_shapes=[pltpu.VMEM((tm, 1), jnp.float32),
                            pltpu.VMEM((tm, 1), jnp.float32)],
        ),
        compiler_params=pltpu.CompilerParams(
            dimension_semantics=("parallel", "arbitrary"),
            vmem_limit_bytes=vmem_limit,
        ),
    )(x2)

    # Pass 2: stream x again and normalize.
    out = pl.pallas_call(
        _normalize_kernel,
        out_shape=jax.ShapeDtypeStruct((R, S), dtype),
        grid_spec=pltpu.PrefetchScalarGridSpec(
            num_scalar_prefetch=0,
            grid=(n_r, n_s),
            in_specs=[pl.BlockSpec((tm, chunk), lambda i, j: (i, j)),
                      pl.BlockSpec((tm, 128), lambda i, j: (i, 0))],
            out_specs=pl.BlockSpec((tm, chunk), lambda i, j: (i, j)),
        ),
        compiler_params=pltpu.CompilerParams(
            dimension_semantics=("parallel", "parallel"),
            vmem_limit_bytes=vmem_limit,
        ),
    )(x2, stats)
    return out


def instance_norm3d(x, *, force_two_pass=False):
    """x: (N, C, D, H, W). InstanceNorm3d forward (affine=False, eps=1e-5)."""
    N, C, D, H, W = x.shape
    R = N * C
    S = D * H * W
    x2 = x.reshape(R, S)

    budget, vmem_limit = _vmem_params()
    itemsize = jnp.dtype(x.dtype).itemsize
    sub = _sublane(x.dtype)

    # Per-row VMEM cost of a (tm, S) tile: in + out double-buffered in x.dtype,
    # plus ~2 f32 tile temporaries created by the in-kernel upcast.
    row_bytes = S * (4 * itemsize + 8)
    rows_fit = budget // max(row_bytes, 1)

    if not force_two_pass and rows_fit >= min(R, sub):
        tm = max((rows_fit // sub) * sub, sub)
        if R >= 4 * sub:
            tm = min(tm, _round_up(pl.cdiv(R, 4), sub))   # >=4 row blocks when possible
        if tm >= R:
            tm = R                                        # full-extent block: always legal
        out2 = _instance_norm_single_pass(x2, R, S, tm, x.dtype, vmem_limit)
    else:
        out2 = _instance_norm_two_pass(x2, R, S, x.dtype, budget, vmem_limit)

    return out2.reshape(N, C, D, H, W)


def _reference(x):
    mean = jnp.mean(x, axis=(2, 3, 4), keepdims=True)
    var = jnp.mean((x - mean) ** 2, axis=(2, 3, 4), keepdims=True)
    return (x - mean) / jnp.sqrt(var + EPS)


if __name__ == "__main__":
    # Module: nn.InstanceNorm3d(2) -> 2 channels, no learnable parameters.
    key = jax.random.PRNGKey(0)
    N, C, D, H, W = 2, 2, 4, 8, 16
    x = jax.random.normal(key, (N, C, D, H, W), dtype=jnp.float32) * 2.0 + 0.5

    # Primary (single streaming pass, row-tiled) path.
    y = instance_norm3d(x)
    jax.block_until_ready(y)
    assert jnp.allclose(y, _reference(x), atol=1e-4, rtol=1e-4), "single-pass mismatch"

    # Large-S two-pass fallback, exercised on the same input.
    y2 = instance_norm3d(x, force_two_pass=True)
    jax.block_until_ready(y2)
    assert jnp.allclose(y2, _reference(x), atol=1e-4, rtol=1e-4), "two-pass mismatch"

    # Odd spatial extent (S not a multiple of 128) through both paths
    # (exercises the un-padded partial blocks and the lane mask).
    x_odd = jax.random.normal(jax.random.PRNGKey(1), (2, 2, 3, 5, 7), dtype=jnp.float32)
    y3 = instance_norm3d(x_odd)
    jax.block_until_ready(y3)
    assert jnp.allclose(y3, _reference(x_odd), atol=1e-4, rtol=1e-4), "odd single-pass mismatch"

    y4 = instance_norm3d(x_odd, force_two_pass=True)
    jax.block_until_ready(y4)
    assert jnp.allclose(y4, _reference(x_odd), atol=1e-4, rtol=1e-4), "odd two-pass mismatch"

    print("KERNEL_OK")
</pallas_src>

<mosaic_0001>
module attributes {stable_mosaic.version = 11 : i64} {
  func.func @_in_norm_rows_kernel(%arg0: i32, %arg1: memref<4x512xf32, #tpu.memory_space<vmem>>, %arg2: memref<4x512xf32, #tpu.memory_space<vmem>>) attributes {dimension_semantics = [#tpu.dimension_semantics<parallel>], iteration_bounds = array<i64: 1>, scalar_prefetch = 0 : i64, scratch_operands = 0 : i64, tpu.core_type = #tpu.core_type<tc>, window_params = [{transform_indices = @transform_0, window_bounds = array<i64: 4, 512>}, {transform_indices = @transform_1, window_bounds = array<i64: 4, 512>}]} {
    %c0 = arith.constant 0 : index
    %c0_0 = arith.constant 0 : index
    %0 = vector.load %arg1[%c0, %c0_0] : memref<4x512xf32, #tpu.memory_space<vmem>>, vector<4x512xf32>
    %cst = arith.constant dense<0.000000e+00> : vector<4xf32>
    %1 = vector.multi_reduction <add>, %0, %cst [1] : vector<4x512xf32> to vector<4xf32>
    %2 = vector.shape_cast %1 : vector<4xf32> to vector<4x1xf32>
    %3 = arith.mulf %0, %0 : vector<4x512xf32>
    %cst_1 = arith.constant dense<0.000000e+00> : vector<4xf32>
    %4 = vector.multi_reduction <add>, %3, %cst_1 [1] : vector<4x512xf32> to vector<4xf32>
    %5 = vector.shape_cast %4 : vector<4xf32> to vector<4x1xf32>
    %cst_2 = arith.constant 0.001953125 : f32
    %6 = vector.broadcast %cst_2 : f32 to vector<4x1xf32>
    %7 = arith.mulf %2, %6 : vector<4x1xf32>
    %cst_3 = arith.constant 0.001953125 : f32
    %8 = vector.broadcast %cst_3 : f32 to vector<4x1xf32>
    %9 = arith.mulf %5, %8 : vector<4x1xf32>
    %10 = arith.mulf %7, %7 : vector<4x1xf32>
    %11 = arith.subf %9, %10 : vector<4x1xf32>
    %cst_4 = arith.constant 0.000000e+00 : f32
    %12 = vector.broadcast %cst_4 : f32 to vector<4x1xf32>
    %13 = arith.maximumf %11, %12 : vector<4x1xf32>
    %cst_5 = arith.constant 9.99999974E-6 : f32
    %14 = vector.broadcast %cst_5 : f32 to vector<4x1xf32>
    %15 = arith.addf %13, %14 : vector<4x1xf32>
    %16 = math.rsqrt %15 : vector<4x1xf32>
    %17 = vector.broadcast %7 : vector<4x1xf32> to vector<4x512xf32>
    %18 = arith.subf %0, %17 : vector<4x512xf32>
    %19 = vector.broadcast %16 : vector<4x1xf32> to vector<4x512xf32>
    %20 = arith.mulf %18, %19 : vector<4x512xf32>
    %c0_6 = arith.constant 0 : index
    %c0_7 = arith.constant 0 : index
    %21 = vector.load %arg2[%c0_6, %c0_7] : memref<4x512xf32, #tpu.memory_space<vmem>>, vector<4x512xf32>
    tpu.vector_store %arg2[%c0_6, %c0_7], %20 {strides = array<i32>} : memref<4x512xf32, #tpu.memory_space<vmem>>, vector<4x512xf32>,
    return
  }
  func.func @transform_0(%arg0: i32) -> (i32, i32) {
    %c0_i32 = arith.constant 0 : i32
    %c0_i32_0 = arith.constant 0 : i32
    return %arg0, %c0_i32 : i32, i32
  }
  func.func @transform_1(%arg0: i32) -> (i32, i32) {
    %c0_i32 = arith.constant 0 : i32
    %c0_i32_0 = arith.constant 0 : i32
    return %arg0, %c0_i32 : i32, i32
  }
}

</mosaic_0001>

<bundles_post_ra>
// kernel: tpu_custom_call.1
= control target key start
LH: loop header
LB: loop body
LE: loop exit
PB: predicated region body
PF: predicated region fallthrough
CT: control target
= control target key end

     0   :  { %6 = vsyncpa [#allocation3], 0  ;;  %s202_s0 = inlined_call_operand.hbm [shape: f32[4,512], index: 0, kind: input, shape index: {}]   ;;  %s203_s1 = inlined_call_operand.hbm [shape: f32[4,512], index: 1, kind: output, shape index: {}]  }
   0x1   :  { %7 = vsyncpa [#allocation4], 0  ;;  %s157_s6 = smov [#allocation2]   ;;  %s109_s10 = scalar_lea.hbm %s202_s0, 256 }
   0x2   :  { %s14_s7 = sshll.u32 %s157_s6, 4  ;;  %p110_p0 = scmp.ne.s32.totalorder %s202_s0, %s109_s10  ;;  %s15_s7 = int_to_ptr.vmem [resolvable:$true] %s14_s7 }
   0x3   :  { %p113_p1 = scmp.lt.u32.totalorder %s109_s10, %s202_s0 }
   0x5   :  { %p115_p2 = pnand %p113_p1, %p110_p0 }
   0x7   :  { %118 = shalt.err (!%p115_p2)
}
   0x8   :  { %s119_s15 = scalar_lea.vmem %s15_s7, 256  ;;  %p124_p4 = scmp.lt.s32.totalorder %s15_s7, %s15_s7 }
   0x9   :  { %p120_p3 = scmp.ne.s32.totalorder %s15_s7, %s119_s15  ;;  %p125_p5 = scmp.lt.s32.totalorder %s119_s15, %s119_s15 }
   0xb   :  { %p126_p6 = por %p125_p5, %p124_p4 }
   0xd   :  { %p127_p7 = pnand %p126_p6, %p120_p3 }
   0xf   :  { %130 = shalt.err (!%p127_p7)
}
  0x10   :  { %17 = dma.hbm_to_vmem [thread:$0]  %s202_s0, 256, %s15_s7, [#allocation3]  }
  0x11   :  { %153 = dma.done.wait [#allocation3], 256  }
  0x12   :  { %154 = vsyncadd [#allocation3], 4294967040  ;;  %vm29_vm0 = vcmask 1043456   ;;  %v21_v0 = vld [vmem:[#allocation2] sm:$0xff]  ;;  %v22_v1 = vld [vmem:[#allocation2 + $0x8] sm:$0xff]  ;;  %v67_v30 = vlaneseq  ;;  %s159_s0 = smov [#allocation5]  }
  0x13   :  { %v25_v2 = vcombine.high %v21_v0, %v21_v0  ;;  %v26_v3 = vcombine.high %v22_v1, %v22_v1  ;;  %v30_v4 = vsel %vm29_vm0, %v21_v0, 0.0  ;;  %v39_v5 = vmul.f32 %v21_v0, %v21_v0  ;;  %s93_s18 = sshll.u32 %s159_s0, 4  ;;  %s94_s18 = int_to_ptr.vmem [resolvable:$true] %s93_s18 }
  0x14   :  { %v40_v6 = vmul.f32 %v22_v1, %v22_v1  ;;  %v33_v8 = vsel %vm29_vm0, %v22_v1, 0.0  ;;  %v158_v28 = vmov 839922192   ;;  %v68_v34 = vshrl.u32 %v67_v30, 7  ;;  %s131_s19 = scalar_lea.vmem %s94_s18, 256  ;;  %p136_p9 = scmp.lt.s32.totalorder %s94_s18, %s94_s18 }
  0x15   :  { %v31_v7 = vsel %vm29_vm0, %v25_v2, 0.0  ;;  %v43_v10 = vcombine.high %v39_v5, %v39_v5  ;;  %v47_v12 = vsel %vm29_vm0, %v39_v5, 0.0  ;;  %v35_v13 = vsel %vm29_vm0, %v26_v3, 0.0  ;;  %p132_p8 = scmp.ne.s32.totalorder %s94_s18, %s131_s19  ;;  %p137_p10 = scmp.lt.s32.totalorder %s131_s19, %s131_s19 }
  0x16   :  { %v32_v9 = vadd.f32 %v31_v7, %v30_v4  ;;  %v44_v11 = vcombine.high %v40_v6, %v40_v6  ;;  %v50_v16 = vsel %vm29_vm0, %v40_v6, 0.0  ;;  %v65_v29 = vunpack.c.l.s4 %v158_v28 }
  0x17   :  { %v48_v15 = vsel %vm29_vm0, %v43_v10, 0.0  ;;  %p138_p11 = por %p137_p10, %p136_p9 }
  0x18   :  { %v34_v14 = vadd.f32 %v33_v8, %v32_v9  ;;  %v49_v17 = vadd.f32 %v48_v15, %v47_v12  ;;  %v52_v19 = vsel %vm29_vm0, %v44_v11, 0.0  ;;  %v66_v33 = vunpack.c.0.s8 %v65_v29 }
  0x19   :  { %p139_p12 = pnand %p138_p11, %p132_p8 }
  0x1a   :  { %v36_v18 = vadd.f32 %v35_v13, %v34_v14  ;;  %v51_v20 = vadd.f32 %v50_v16, %v49_v17  ;;  %v69_v35 = vsub.s32 %v66_v33, %v68_v34 }
  0x1c   :  { %37 = vadd.xlane.f32.xlu0 %v36_v18  ;;  %v53_v21 = vadd.f32 %v52_v19, %v51_v20 }
  0x20   :  { %54 = vadd.xlane.f32.xlu0 %v53_v21 }
  0xa9   :  { %v38_v22 = vpop.xlane.xlu0 %37 }
  0xaa   :  { %v56_v23 = vmul.f32 0.001953125, %v38_v22 }
  0xac   :  { %v58_v25 = vmul.f32 %v56_v23, %v56_v23  ;;  %v70_v36 = vrot.slane %v56_v23, %v69_v35 }
  0xad   :  { %v55_v24 = vpop.xlane.xlu0 %54 }
  0xae   :  { %v57_v26 = vmul.f32 0.001953125, %v55_v24  ;;  %v72_v38 = vsub.f32 %v21_v0, %v70_v36  ;;  %v73_v39 = vsub.f32 %v22_v1, %v70_v36 }
  0xb0   :  { %v59_v27 = vsub.f32 %v57_v26, %v58_v25 }
  0xb2   :  { %v60_v31 = vmax.f32 %v59_v27, 0.0 }
  0xb4   :  { %v61_v32 = vadd.f32 1e-05, %v60_v31 }
  0xb6   :  { %107 = vrsqrt.f32 %v61_v32 }
  0xc0   :  { %v108_v37 = vpop.eup %107 }
  0xc1   :  { %v81_v40 = vrot.slane %v108_v37, %v69_v35 }
  0xc3   :  { %v83_v41 = vmul.f32 %v81_v40, %v72_v38  ;;  %v84_v42 = vmul.f32 %v81_v40, %v73_v39 }
  0xc5   :  { %85 = vst [vmem:[#allocation5] sm:$0xff] %v83_v41  ;;  %86 = vst [vmem:[#allocation5 + $0x8] sm:$0xff] %v84_v42 }
  0xc6   :  { %142 = shalt.err (!%p139_p12)
}
  0xc7   :  { %s143_s22 = scalar_lea.hbm %s203_s1, 256 }
  0xc8   :  { %p144_p13 = scmp.ne.s32.totalorder %s203_s1, %s143_s22  ;;  %p147_p0 = scmp.lt.u32.totalorder %s143_s22, %s203_s1 }
  0xca   :  { %p149_p1 = pnand %p147_p0, %p144_p13 }
  0xcc   :  { %152 = shalt.err (!%p149_p1)
}
  0xcd   :  { %96 = dma.vmem_to_hbm [thread:$0]  %s94_s18, 256, %s203_s1, [#allocation4]  }
  0xce   :  { %155 = dma.done.wait [#allocation4], 256  }
  0xcf   :  { %156 = vsyncadd [#allocation4], 4294967040 }
  0xd0   :  { %100 = vsyncpa [#allocation3], 1 }
  0xd1   :  { %101 = vsyncpa [#allocation4], 1 }

</bundles_post_ra>
